<compile_context>
chip_gen: v7x
topology: tpu7x:2x2x1
jax: 0.10.0
libtpu: 0.0.40
codegen_flags: <defaults>
</compile_context>

<pallas_src>
import jax
import jax.numpy as jnp
from jax.experimental import pallas as pl
from jax.experimental.pallas import tpu as pltpu


def _combine_kernel(hr_ref, ae_ref, out_ref):
    """Concatenate two (TB, D) feature blocks along the lane (feature) axis.

    hr_ref : (TB, Dh) VMEM ref   -- large, lane-dense slab, stored first
    ae_ref : (TB, Da) VMEM ref   -- small slab, stored second
    out_ref: (TB, Dh + Da) VMEM ref
    """
    dh = hr_ref.shape[1]
    # Static slices -> plain vector stores; in-kernel cast is free (VPU idle).
    out_ref[:, :dh] = hr_ref[...].astype(out_ref.dtype)
    out_ref[:, dh:] = ae_ref[...].astype(out_ref.dtype)
    # TODO(synk): if a config has a large, non-128-multiple da and the
    # consumer tolerates zero padding, pad da up to a multiple of 128 in the
    # wrapper so this second store is an unmasked vst as well.


def _cdiv(a, b):
    return -(-a // b)


def _round_up(a, b):
    return _cdiv(a, b) * b


def _lane_padded(d):
    """Lanes actually occupied per row by a (rows, d) VMEM block."""
    return max(_round_up(max(int(d), 1), 128), 128)


def _vmem_budgets():
    """Return (double-buffered block budget, scoped vmem limit) in bytes."""
    cap = None
    try:
        cap = int(getattr(pltpu.get_tpu_info(), "vmem_capacity_bytes", 0)) or None
    except Exception:  # no TPU info available at trace time -> be conservative
        cap = None
    if cap is None or cap <= 64 * 1024 * 1024:
        # v7x: 64 MiB physical per TensorCore -> stay well under it.
        return 24 * 1024 * 1024, 48 * 1024 * 1024
    # v5e / v6e: 128 MiB physical -> bigger tiles, fewer ~0.35 us grid steps.
    return 44 * 1024 * 1024, 96 * 1024 * 1024


def _pick_batch_tile(b, dh, da, it_hr, it_ae, it_out, budget_bytes):
    """Largest batch tile whose double-buffered, lane-padded footprint fits."""
    d_out = dh + da
    # x2: BlockSpec double-buffers each array; charge lane-padded widths.
    per_row = 2 * (_lane_padded(dh) * it_hr
                   + _lane_padded(da) * it_ae
                   + _lane_padded(d_out) * it_out)

    # Sub-32-bit dtypes pack 2/4 rows per sublane -> dtype-aware row multiple
    # (8 for f32/i32, 16 for bf16, 32 for int8/fp8).
    min_item = max(1, min(it_hr, it_ae, it_out))
    row_mult = 8 * max(1, 4 // min_item)

    tb = max(1, budget_bytes // max(1, per_row))
    if tb >= b:
        if b >= 2 * row_mult:
            # Whole batch would fit one block: split so the grid has >=2
            # blocks and the 'parallel' batch axis can shard across v7x's two
            # TensorCores (neutral on single-TC v5e/v6e).
            tb = min(_round_up(_cdiv(b, 2), row_mult), b)
        else:
            tb = b  # tiny batch: one full-extent block
    else:
        # Round down to the packed-sublane multiple (BlockSpec (8,128) rule).
        tb = min(max(row_mult, (tb // row_mult) * row_mult), b)
    return int(tb)


def combine_first_stage_output(hrnet_output, ae_output):
    """JAX wrapper reproducing CombineFirstStageOutput.forward semantics.

    Parameters
    ----------
    hrnet_output : (B, C, H, W) array  (NCHW pose embedding from HRNet)
    ae_output    : (B, Da) array       (autoencoder feature vector)

    Returns
    -------
    (B, C*H*W + Da) array in the promoted input dtype — combined feature
    for the classifier.
    """
    b = hrnet_output.shape[0]
    assert ae_output.shape[0] == b, "batch dims must match"

    # Glue: flatten per-sample (pure layout plumbing, no compute, no cast).
    hr_flat = jnp.reshape(hrnet_output, (b, -1))
    ae_flat = jnp.reshape(ae_output, (b, -1))

    dh = hr_flat.shape[1]
    da = ae_flat.shape[1]
    d_out = dh + da
    out_dtype = jnp.result_type(hr_flat.dtype, ae_flat.dtype)

    it_hr = jnp.dtype(hr_flat.dtype).itemsize
    it_ae = jnp.dtype(ae_flat.dtype).itemsize
    it_out = jnp.dtype(out_dtype).itemsize

    budget_bytes, vmem_limit = _vmem_budgets()
    tb = _pick_batch_tile(b, dh, da, it_hr, it_ae, it_out, budget_bytes)
    grid = (_cdiv(b, tb),)

    # Pure memory traffic: read both inputs once, write the output once.
    bytes_accessed = b * (dh * it_hr + da * it_ae + d_out * it_out)

    out = pl.pallas_call(
        _combine_kernel,
        out_shape=jax.ShapeDtypeStruct((b, d_out), out_dtype),
        grid=grid,
        in_specs=[
            pl.BlockSpec((tb, dh), lambda i: (i, 0)),
            pl.BlockSpec((tb, da), lambda i: (i, 0)),
        ],
        out_specs=pl.BlockSpec((tb, d_out), lambda i: (i, 0)),
        compiler_params=pltpu.CompilerParams(
            # Batch axis is embarrassingly parallel -> megacore-shardable on
            # v7x (2 TCs); harmless on v5e/v6e.
            dimension_semantics=("parallel",),
            vmem_limit_bytes=vmem_limit,
        ),
        cost_estimate=pl.CostEstimate(
            flops=0, transcendentals=0, bytes_accessed=int(bytes_accessed)),
    )(hr_flat, ae_flat)
    return out


if __name__ == "__main__":
    key = jax.random.PRNGKey(0)
    k_hr, k_ae = jax.random.split(key)

    # Small shapes consistent with the forward signature:
    #   hrnet_output: pose embedding feature map (B, C, H, W)
    #   ae_output:    autoencoder bottleneck features (B, hidden)
    B, C, H, W = 2, 4, 16, 16
    HIDDEN = 32

    hrnet_output = jax.random.normal(k_hr, (B, C, H, W), dtype=jnp.float32)
    ae_output = jax.random.normal(k_ae, (B, HIDDEN), dtype=jnp.float32)

    out = combine_first_stage_output(hrnet_output, ae_output)
    out = jax.block_until_ready(out)

    # Reference check against plain JAX concat.
    ref = jnp.concatenate(
        [hrnet_output.reshape(B, -1), ae_output.reshape(B, -1)], axis=-1
    )
    assert out.shape == (B, C * H * W + HIDDEN), out.shape
    assert out.dtype == ref.dtype, (out.dtype, ref.dtype)
    assert jnp.allclose(out, ref), "kernel output mismatch vs reference"

    print("KERNEL_OK")
</pallas_src>

<mosaic_0001>
module attributes {stable_mosaic.version = 11 : i64} {
  func.func @_combine_kernel(%arg0: i32, %arg1: memref<2x1024xf32, #tpu.memory_space<vmem>>, %arg2: memref<2x32xf32, #tpu.memory_space<vmem>>, %arg3: memref<2x1056xf32, #tpu.memory_space<vmem>>) attributes {dimension_semantics = [#tpu.dimension_semantics<parallel>], iteration_bounds = array<i64: 1>, scalar_prefetch = 0 : i64, scratch_operands = 0 : i64, tpu.core_type = #tpu.core_type<tc>, window_params = [{transform_indices = @transform_0, window_bounds = array<i64: 2, 1024>}, {transform_indices = @transform_1, window_bounds = array<i64: 2, 32>}, {transform_indices = @transform_2, window_bounds = array<i64: 2, 1056>}]} {
    %c0 = arith.constant 0 : index
    %c0_0 = arith.constant 0 : index
    %0 = vector.load %arg1[%c0, %c0_0] : memref<2x1024xf32, #tpu.memory_space<vmem>>, vector<2x1024xf32>
    %c0_1 = arith.constant 0 : index
    %c0_2 = arith.constant 0 : index
    %1 = vector.load %arg3[%c0_1, %c0_2] : memref<2x1056xf32, #tpu.memory_space<vmem>>, vector<2x1024xf32>
    tpu.vector_store %arg3[%c0_1, %c0_2], %0 {strides = array<i32>} : memref<2x1056xf32, #tpu.memory_space<vmem>>, vector<2x1024xf32>,
    %c0_3 = arith.constant 0 : index
    %c0_4 = arith.constant 0 : index
    %2 = vector.load %arg2[%c0_3, %c0_4] : memref<2x32xf32, #tpu.memory_space<vmem>>, vector<2x32xf32>
    %c0_5 = arith.constant 0 : index
    %c1024 = arith.constant 1024 : index
    %3 = vector.load %arg3[%c0_5, %c1024] : memref<2x1056xf32, #tpu.memory_space<vmem>>, vector<2x32xf32>
    tpu.vector_store %arg3[%c0_5, %c1024], %2 {strides = array<i32>} : memref<2x1056xf32, #tpu.memory_space<vmem>>, vector<2x32xf32>,
    return
  }
  func.func @transform_0(%arg0: i32) -> (i32, i32) {
    %c0_i32 = arith.constant 0 : i32
    %c0_i32_0 = arith.constant 0 : i32
    return %arg0, %c0_i32 : i32, i32
  }
  func.func @transform_1(%arg0: i32) -> (i32, i32) {
    %c0_i32 = arith.constant 0 : i32
    %c0_i32_0 = arith.constant 0 : i32
    return %arg0, %c0_i32 : i32, i32
  }
  func.func @transform_2(%arg0: i32) -> (i32, i32) {
    %c0_i32 = arith.constant 0 : i32
    %c0_i32_0 = arith.constant 0 : i32
    return %arg0, %c0_i32 : i32, i32
  }
}

</mosaic_0001>

<bundles_post_ra>
// kernel: tpu_custom_call.1
= control target key start
LH: loop header
LB: loop body
LE: loop exit
PB: predicated region body
PF: predicated region fallthrough
CT: control target
= control target key end

     0   :  { %7 = vsyncpa [#allocation3], 0  ;;  %s140_s0 = inlined_call_operand.hbm [shape: f32[2,1024], index: 0, kind: input, shape index: {}]   ;;  %s141_s1 = inlined_call_operand.vmem [shape: f32[2,32], index: 1, kind: input, shape index: {}]   ;;  %s142_s2 = inlined_call_operand.hbm [shape: f32[2,1056], index: 2, kind: output, shape index: {}]  }
   0x1   :  { %8 = vsyncpa [#allocation4], 0  ;;  %s96_s9 = smov [#allocation2]   ;;  %s48_s13 = scalar_lea.hbm %s140_s0, 256 }
   0x2   :  { %s15_s10 = sshll.u32 %s96_s9, 4  ;;  %p49_p0 = scmp.ne.s32.totalorder %s140_s0, %s48_s13  ;;  %s16_s10 = int_to_ptr.vmem [resolvable:$true] %s15_s10 }
   0x3   :  { %p52_p1 = scmp.lt.u32.totalorder %s48_s13, %s140_s0 }
   0x5   :  { %p54_p2 = pnand %p52_p1, %p49_p0 }
   0x7   :  { %57 = shalt.err (!%p54_p2)
}
   0x8   :  { %s58_s18 = scalar_lea.vmem %s16_s10, 256  ;;  %p63_p4 = scmp.lt.s32.totalorder %s16_s10, %s16_s10 }
   0x9   :  { %p59_p3 = scmp.ne.s32.totalorder %s16_s10, %s58_s18  ;;  %p64_p5 = scmp.lt.s32.totalorder %s58_s18, %s58_s18 }
   0xb   :  { %p65_p6 = por %p64_p5, %p63_p4 }
   0xd   :  { %p66_p7 = pnand %p65_p6, %p59_p3 }
   0xf   :  { %69 = shalt.err (!%p66_p7)
}
  0x10   :  { %18 = dma.hbm_to_vmem [thread:$0]  %s140_s0, 256, %s16_s10, [#allocation3]  }
  0x11   :  { %92 = dma.done.wait [#allocation3], 256  }
  0x12   :  { %93 = vsyncadd [#allocation3], 4294967040  ;;  %s97_s21 = smov [#allocation5]   ;;  %vm29_vm0 = vcmask 254976   ;;  %v24_v0 = vld [vmem:[#allocation2] sm:$0xff]  ;;  %v25_v1 = vld [vmem:[#allocation2 + $0x8] sm:$0xff] }
  0x13   :  { %s37_s22 = sshll.u32 %s97_s21, 4  ;;  %v28_v2 = vld [vmem:[%s141_s1] sm:$0x3]  ;;  %26 = vst [vmem:[#allocation5] sm:$0xff] %v24_v0  ;;  %27 = vst [vmem:[#allocation5 + $0x8] sm:$0xff] %v25_v1  ;;  %s38_s22 = int_to_ptr.vmem [resolvable:$true] %s37_s22 }
  0x14   :  { %30 = vst.msk [vmem:[#allocation5 + $0x10] sm:$0x3] %vm29_vm0, %v28_v2  ;;  %s70_s25 = scalar_lea.vmem %s38_s22, 288  ;;  %p75_p9 = scmp.lt.s32.totalorder %s38_s22, %s38_s22 }
  0x15   :  { %p71_p8 = scmp.ne.s32.totalorder %s38_s22, %s70_s25  ;;  %p76_p10 = scmp.lt.s32.totalorder %s70_s25, %s70_s25 }
  0x17   :  { %p77_p11 = por %p76_p10, %p75_p9 }
  0x19   :  { %p78_p12 = pnand %p77_p11, %p71_p8 }
  0x1b   :  { %81 = shalt.err (!%p78_p12)
}
  0x1c   :  { %s82_s27 = scalar_lea.hbm %s142_s2, 288 }
  0x1d   :  { %p83_p13 = scmp.ne.s32.totalorder %s142_s2, %s82_s27  ;;  %p86_p0 = scmp.lt.u32.totalorder %s82_s27, %s142_s2 }
  0x1f   :  { %p88_p1 = pnand %p86_p0, %p83_p13 }
  0x21   :  { %91 = shalt.err (!%p88_p1)
}
  0x22   :  { %40 = dma.vmem_to_hbm [thread:$0]  %s38_s22, 288, %s142_s2, [#allocation4]  }
  0x23   :  { %94 = dma.done.wait [#allocation4], 288  }
  0x24   :  { %95 = vsyncadd [#allocation4], 4294967008 }
  0x25   :  { %44 = vsyncpa [#allocation3], 1 }
  0x26   :  { %45 = vsyncpa [#allocation4], 1 }

</bundles_post_ra>
